<compile_context>
chip_gen: v7x
topology: tpu7x:2x2x1
jax: 0.10.0
libtpu: 0.0.40
codegen_flags: <defaults>
</compile_context>

<pallas_src>
import math

import jax
import jax.numpy as jnp
from jax.experimental import pallas as pl
from jax.experimental.pallas import tpu as pltpu


def _cdiv(a, b):
    return -(-a // b)


# ---------------------------------------------------------------------------
# Kernels
# ---------------------------------------------------------------------------
def _drop_path_kernel(scale_ref, x_ref, o_ref):
    """scale_ref: (bt, 1) f32 per-sample factor in {0, 1/keep_prob}.
    x_ref / o_ref: (bt, nt) lane-dense tiles.  Pure broadcast multiply."""
    o_ref[...] = (x_ref[...].astype(jnp.float32) * scale_ref[...]).astype(o_ref.dtype)


def _drop_path_add_kernel(scale_ref, x_ref, r_ref, o_ref):
    """Fused residual + drop_path(branch):  o = r + x * scale."""
    o_ref[...] = (
        r_ref[...].astype(jnp.float32)
        + x_ref[...].astype(jnp.float32) * scale_ref[...]
    ).astype(o_ref.dtype)


# ---------------------------------------------------------------------------
# Tiling
# ---------------------------------------------------------------------------
def _choose_tiles(B, N, itemsize, *, target_bytes=4 << 20, min_blocks=8,
                  min_tile_bytes=512 << 10):
    """Pick a (bt, nt) block for a (B, N) array.

    * bt is a multiple of the dtype's native sublane count (8 f32, 16 bf16,
      32 int8) or equals B; nt is a multiple of 128 lanes or equals N.
    * tiles are ~target_bytes (double-buffered in+out stays well under the
      explicit 32 MiB VMEM limit set below, on every TPU generation).
    * large inputs get >= min_blocks grid steps so DMA in/out overlap and a
      v7x megacore can shard the grid; tiny inputs stay a single block.
    """
    sub = max(8, 256 // (8 * itemsize))  # native sublane multiple per dtype

    # Lane (N) tiling: keep full lane-dense rows when a sublane-group fits.
    if min(B, sub) * N * itemsize <= target_bytes:
        nt = N
    else:
        nt = max(128, (target_bytes // (min(B, sub) * itemsize)) // 128 * 128)
        nt = min(nt, N)

    # Sublane (B) tiling.
    if B <= sub:
        bt = B
    else:
        raw = max(1, target_bytes // max(1, nt * itemsize))
        bt = min(B, max(sub, (raw // sub) * sub))

    # Enforce a minimum grid-step count for pipelining / TensorCore sharding,
    # without shrinking tiles below ~min_tile_bytes.
    while _cdiv(B, bt) * _cdiv(N, nt) < min_blocks:
        if bt > sub and (bt // 2) * nt * itemsize >= min_tile_bytes:
            bt = max(sub, ((bt // 2) // sub) * sub)
        elif nt > 256 and bt * (nt // 2) * itemsize >= min_tile_bytes:
            nt = max(128, ((nt // 2) // 128) * 128)
        else:
            break
    return int(bt), int(nt)


# ---------------------------------------------------------------------------
# pallas_call launcher
# ---------------------------------------------------------------------------
def _launch(kernel, scale, tensors, out_dtype, alias_input, block=None):
    B, N = tensors[0].shape
    itemsize = jnp.dtype(out_dtype).itemsize
    bt, nt = block if block is not None else _choose_tiles(B, N, itemsize)
    grid = (_cdiv(B, bt), _cdiv(N, nt))
    tile_spec = pl.BlockSpec((bt, nt), lambda i, j: (i, j))
    return pl.pallas_call(
        kernel,
        out_shape=jax.ShapeDtypeStruct((B, N), out_dtype),
        grid=grid,
        in_specs=[pl.BlockSpec((bt, 1), lambda i, j: (i, 0))]   # per-sample scale
                 + [tile_spec] * len(tensors),                  # lane-dense tiles
        out_specs=tile_spec,
        # The aliased operand is not needed for DropPath's backward (only the
        # per-sample scale is), so its buffer can be reused for the output.
        input_output_aliases={alias_input: 0},
        compiler_params=pltpu.CompilerParams(
            dimension_semantics=("parallel", "parallel"),
            vmem_limit_bytes=32 * 1024 * 1024,
        ),
        cost_estimate=pl.CostEstimate(
            flops=len(tensors) * B * N,
            transcendentals=0,
            bytes_accessed=(len(tensors) + 1) * B * N * itemsize + B * 4,
        ),
    )(scale, *tensors)


def _per_sample_scale(key, B, keep_prob):
    # scale[b] = floor(keep_prob + U[0,1)) / keep_prob  in {0, 1/keep_prob}
    u = jax.random.uniform(key, (B,), dtype=jnp.float32)
    return (jnp.floor(keep_prob + u) / keep_prob).reshape(B, 1)


# ---------------------------------------------------------------------------
# Public API
# ---------------------------------------------------------------------------
def drop_path(x, drop_prob: float = 0.0, training: bool = False, *,
              key=None, seed: int = 0, _block=None):
    """JAX/Pallas equivalent of timm's drop_path (per-sample stochastic depth)."""
    drop_prob = float(drop_prob)
    if drop_prob == 0.0 or not training:
        return x
    keep_prob = 1.0 - drop_prob
    if keep_prob <= 0.0:
        return jnp.zeros_like(x)
    if key is None:
        key = jax.random.PRNGKey(seed)

    B = x.shape[0]
    N = int(math.prod(x.shape[1:])) if x.ndim > 1 else 1
    x2 = x.reshape(B, N)
    scale = _per_sample_scale(key, B, keep_prob)
    out2 = _launch(_drop_path_kernel, scale, (x2,), x.dtype,
                   alias_input=1, block=_block)
    return out2.reshape(x.shape)


def drop_path_add(residual, x, drop_prob: float = 0.0, training: bool = False, *,
                  key=None, seed: int = 0, _block=None):
    """Fused  residual + drop_path(x)  — recommended inside residual blocks
    (cuts HBM traffic ~40% vs. running DropPath and the add separately)."""
    drop_prob = float(drop_prob)
    if drop_prob == 0.0 or not training:
        return residual + x
    keep_prob = 1.0 - drop_prob
    if keep_prob <= 0.0:
        return residual
    if key is None:
        key = jax.random.PRNGKey(seed)

    B = x.shape[0]
    N = int(math.prod(x.shape[1:])) if x.ndim > 1 else 1
    x2 = x.reshape(B, N).astype(residual.dtype)
    r2 = residual.reshape(B, N)
    scale = _per_sample_scale(key, B, keep_prob)
    out2 = _launch(_drop_path_add_kernel, scale, (x2, r2), residual.dtype,
                   alias_input=2, block=_block)
    return out2.reshape(residual.shape)


class DropPath:
    """Mirror of the PyTorch module (no parameters)."""

    def __init__(self, drop_prob=None):
        self.drop_prob = drop_prob
        self.training = True

    def __call__(self, x, key=None, seed: int = 0):
        p = self.drop_prob if self.drop_prob is not None else 0.0
        return drop_path(x, p, self.training, key=key, seed=seed)


# ---------------------------------------------------------------------------
# Self-test
# ---------------------------------------------------------------------------
if __name__ == "__main__":
    root = jax.random.PRNGKey(0)
    kx, kdrop, kx2, kdrop2, kx3, kdrop3, kxb, kdropb, kr = jax.random.split(root, 9)

    # 1) Small Swin-like token tensor (B, H*W, C), f32.
    B, L, C = 2, 64, 32
    x = jax.random.normal(kx, (B, L, C), dtype=jnp.float32)
    keep_prob = 0.75
    module = DropPath(drop_prob=0.25)
    module.training = True
    y = jax.block_until_ready(module(x, key=kdrop))
    assert y.shape == x.shape and y.dtype == x.dtype
    u = jax.random.uniform(kdrop, (B,), dtype=jnp.float32)
    scale_ref = jnp.floor(keep_prob + u) / keep_prob
    ref = x * scale_ref[:, None, None]
    assert bool(jnp.allclose(y, ref, atol=1e-6, rtol=1e-5))
    for b in range(B):
        yb = y[b]
        assert bool(jnp.all(yb == 0.0)) or bool(
            jnp.allclose(yb, x[b] / keep_prob, atol=1e-6, rtol=1e-5))

    # 2) Non-lane-aligned shape (C=96, L=49).
    B2, L2, C2 = 16, 49, 96
    x_big = jax.random.normal(kx2, (B2, L2, C2), dtype=jnp.float32)
    y_big = jax.block_until_ready(drop_path(x_big, 0.1, True, key=kdrop2))
    u2 = jax.random.uniform(kdrop2, (B2,), dtype=jnp.float32)
    ref_big = x_big * (jnp.floor(0.9 + u2) / 0.9)[:, None, None]
    assert bool(jnp.allclose(y_big, ref_big, atol=1e-6, rtol=1e-5))

    # 3) Partial trailing blocks in BOTH grid axes (B % bt != 0, N % nt != 0)
    #    via a forced (8, 128) block on a (20, 300) flattened array.
    B3, L3, C3 = 20, 10, 30
    x_part = jax.random.normal(kx3, (B3, L3, C3), dtype=jnp.float32)
    y_part = jax.block_until_ready(
        drop_path(x_part, 0.2, True, key=kdrop3, _block=(8, 128)))
    u3 = jax.random.uniform(kdrop3, (B3,), dtype=jnp.float32)
    ref_part = x_part * (jnp.floor(0.8 + u3) / 0.8)[:, None, None]
    assert bool(jnp.allclose(y_part, ref_part, atol=1e-6, rtol=1e-5))

    # 4) bf16 activations (dtype-aware sublane path); loose tolerance.
    Bb, Lb, Cb = 4, 16, 64
    x_bf = jax.random.normal(kxb, (Bb, Lb, Cb), dtype=jnp.bfloat16)
    y_bf = jax.block_until_ready(drop_path(x_bf, 0.2, True, key=kdropb))
    ub = jax.random.uniform(kdropb, (Bb,), dtype=jnp.float32)
    ref_bf = (x_bf.astype(jnp.float32)
              * (jnp.floor(0.8 + ub) / 0.8)[:, None, None]).astype(jnp.bfloat16)
    assert bool(jnp.allclose(y_bf.astype(jnp.float32), ref_bf.astype(jnp.float32),
                             atol=1e-2, rtol=1e-2))

    # 5) Fused residual + drop_path(branch).
    r = jax.random.normal(kr, (B2, L2, C2), dtype=jnp.float32)
    y_fused = jax.block_until_ready(
        drop_path_add(r, x_big, 0.3, True, key=kdrop2))
    u_f = jax.random.uniform(kdrop2, (B2,), dtype=jnp.float32)
    ref_fused = r + x_big * (jnp.floor(0.7 + u_f) / 0.7)[:, None, None]
    assert bool(jnp.allclose(y_fused, ref_fused, atol=1e-5, rtol=1e-5))

    # 6) Eval mode: identity.
    module.training = False
    y_eval = jax.block_until_ready(module(x, key=kdrop))
    assert bool(jnp.allclose(y_eval, x))

    print("KERNEL_OK")
</pallas_src>

<mosaic_0001>
module attributes {stable_mosaic.version = 11 : i64} {
  func.func @_drop_path_kernel(%arg0: i32, %arg1: i32, %arg2: memref<2x1xf32, #tpu.memory_space<vmem>>, %arg3: memref<2x2048xf32, #tpu.memory_space<vmem>>, %arg4: memref<2x2048xf32, #tpu.memory_space<vmem>>) attributes {dimension_semantics = [#tpu.dimension_semantics<parallel>, #tpu.dimension_semantics<parallel>], iteration_bounds = array<i64: 1, 1>, scalar_prefetch = 0 : i64, scratch_operands = 0 : i64, tpu.core_type = #tpu.core_type<tc>, window_params = [{transform_indices = @transform_0, window_bounds = array<i64: 2, 1>}, {transform_indices = @transform_1, window_bounds = array<i64: 2, 2048>}, {transform_indices = @transform_2, window_bounds = array<i64: 2, 2048>}]} {
    %c0 = arith.constant 0 : index
    %c0_0 = arith.constant 0 : index
    %0 = vector.load %arg3[%c0, %c0_0] : memref<2x2048xf32, #tpu.memory_space<vmem>>, vector<2x2048xf32>
    %c0_1 = arith.constant 0 : index
    %c0_2 = arith.constant 0 : index
    %1 = vector.load %arg2[%c0_1, %c0_2] : memref<2x1xf32, #tpu.memory_space<vmem>>, vector<2x1xf32>
    %2 = vector.broadcast %1 : vector<2x1xf32> to vector<2x2048xf32>
    %3 = arith.mulf %0, %2 : vector<2x2048xf32>
    %c0_3 = arith.constant 0 : index
    %c0_4 = arith.constant 0 : index
    %4 = vector.load %arg4[%c0_3, %c0_4] : memref<2x2048xf32, #tpu.memory_space<vmem>>, vector<2x2048xf32>
    tpu.vector_store %arg4[%c0_3, %c0_4], %3 {strides = array<i32>} : memref<2x2048xf32, #tpu.memory_space<vmem>>, vector<2x2048xf32>,
    return
  }
  func.func @transform_0(%arg0: i32, %arg1: i32) -> (i32, i32) {
    %c0_i32 = arith.constant 0 : i32
    %c0_i32_0 = arith.constant 0 : i32
    return %arg0, %c0_i32 : i32, i32
  }
  func.func @transform_1(%arg0: i32, %arg1: i32) -> (i32, i32) {
    %c0_i32 = arith.constant 0 : i32
    return %arg0, %arg1 : i32, i32
  }
  func.func @transform_2(%arg0: i32, %arg1: i32) -> (i32, i32) {
    %c0_i32 = arith.constant 0 : i32
    return %arg0, %arg1 : i32, i32
  }
}

</mosaic_0001>

<bundles_post_ra>
// kernel: tpu_custom_call.1
= control target key start
LH: loop header
LB: loop body
LE: loop exit
PB: predicated region body
PF: predicated region fallthrough
CT: control target
= control target key end

     0   :  { %7 = vsyncpa [#allocation3], 0  ;;  %s163_s0 = inlined_call_operand.vmem [shape: f32[2,1], index: 0, kind: input, shape index: {}]   ;;  %s164_s1 = inlined_call_operand.hbm [shape: f32[2,2048], index: 1, kind: input, shape index: {}, may-alias: {1,2}]   ;;  %s165_s2 = inlined_call_operand.hbm [shape: f32[2,2048], index: 2, kind: output, shape index: {}, may-alias: {1,2}]  }
   0x1   :  { %8 = vsyncpa [#allocation4], 0  ;;  %s117_s9 = smov [#allocation2]   ;;  %s69_s13 = scalar_lea.hbm %s164_s1, 512 }
   0x2   :  { %s17_s10 = sshll.u32 %s117_s9, 4  ;;  %p70_p0 = scmp.ne.s32.totalorder %s164_s1, %s69_s13  ;;  %s18_s10 = int_to_ptr.vmem [resolvable:$true] %s17_s10 }
   0x3   :  { %p73_p1 = scmp.lt.u32.totalorder %s69_s13, %s164_s1 }
   0x5   :  { %p75_p2 = pnand %p73_p1, %p70_p0 }
   0x7   :  { %78 = shalt.err (!%p75_p2)
}
   0x8   :  { %s79_s18 = scalar_lea.vmem %s18_s10, 512  ;;  %p84_p4 = scmp.lt.s32.totalorder %s18_s10, %s18_s10 }
   0x9   :  { %p80_p3 = scmp.ne.s32.totalorder %s18_s10, %s79_s18  ;;  %p85_p5 = scmp.lt.s32.totalorder %s79_s18, %s79_s18 }
   0xb   :  { %p86_p6 = por %p85_p5, %p84_p4 }
   0xd   :  { %p87_p7 = pnand %p86_p6, %p80_p3 }
   0xf   :  { %90 = shalt.err (!%p87_p7)
}
  0x10   :  { %20 = dma.hbm_to_vmem [thread:$0]  %s164_s1, 512, %s18_s10, [#allocation3]  }
  0x11   :  { %113 = dma.done.wait [#allocation3], 512  }
  0x12   :  { %114 = vsyncadd [#allocation3], 4294966784  ;;  %v118_v0 = vmov 0   ;;  %v28_v1 = vld [vmem:[%s163_s0] sm:$0x3]  ;;  %v36_v4 = vlaneseq  ;;  %v25_v10 = vld [vmem:[#allocation2 + $0x8] sm:$0xff] }
  0x13   :  { %68 = vset.pattern.permute.xlu0 %v118_v0  ;;  %v119_v2 = vmov 269488144   ;;  %v24_v8 = vld [vmem:[#allocation2] sm:$0xff]  ;;  %v26_v11 = vld [vmem:[#allocation2 + $0x10] sm:$0xff]  ;;  %v27_v12 = vld [vmem:[#allocation2 + $0x18] sm:$0xff]  ;;  %s120_s1 = smov [#allocation5]  }
  0x14   :  { %31 = vperm.xlu0 %68, %v28_v1   ;;  %v34_v3 = vunpack.c.l.s4 %v119_v2  ;;  %v37_v6 = vshrl.u32 %v36_v4, 7  ;;  %s55_s23 = sshll.u32 %s120_s1, 4  ;;  %s56_s23 = int_to_ptr.vmem [resolvable:$true] %s55_s23 }
  0x15   :  { %s91_s0 = scalar_lea.vmem %s56_s23, 512  ;;  %p96_p9 = scmp.lt.s32.totalorder %s56_s23, %s56_s23 }
  0x16   :  { %v35_v5 = vunpack.c.0.s8 %v34_v3  ;;  %p92_p8 = scmp.ne.s32.totalorder %s56_s23, %s91_s0  ;;  %p97_p10 = scmp.lt.s32.totalorder %s91_s0, %s91_s0 }
  0x18   :  { %v38_v7 = vsub.s32 %v35_v5, %v37_v6  ;;  %p98_p11 = por %p97_p10, %p96_p9 }
  0x1a   :  { %p99_p12 = pnand %p98_p11, %p92_p8 }
  0x93   :  { %v32_v9 = vpop.permute.xlu0 %31 }
  0x94   :  { %v39_v13 = vrot.slane %v32_v9, %v38_v7 }
  0x96   :  { %v41_v14 = vmul.f32 %v39_v13, %v24_v8  ;;  %v42_v15 = vmul.f32 %v39_v13, %v25_v10  ;;  %v43_v16 = vmul.f32 %v39_v13, %v26_v11  ;;  %v44_v17 = vmul.f32 %v39_v13, %v27_v12 }
  0x98   :  { %45 = vst [vmem:[#allocation5] sm:$0xff] %v41_v14  ;;  %46 = vst [vmem:[#allocation5 + $0x8] sm:$0xff] %v42_v15 }
  0x99   :  { %47 = vst [vmem:[#allocation5 + $0x10] sm:$0xff] %v43_v16  ;;  %48 = vst [vmem:[#allocation5 + $0x18] sm:$0xff] %v44_v17 }
  0x9a   :  { %102 = shalt.err (!%p99_p12)
}
  0x9b   :  { %s103_s26 = scalar_lea.hbm %s165_s2, 512 }
  0x9c   :  { %p104_p13 = scmp.ne.s32.totalorder %s165_s2, %s103_s26  ;;  %p107_p0 = scmp.lt.u32.totalorder %s103_s26, %s165_s2 }
  0x9e   :  { %p109_p1 = pnand %p107_p0, %p104_p13 }
  0xa0   :  { %112 = shalt.err (!%p109_p1)
}
  0xa1   :  { %58 = dma.vmem_to_hbm [thread:$0]  %s56_s23, 512, %s165_s2, [#allocation4]  }
  0xa2   :  { %115 = dma.done.wait [#allocation4], 512  }
  0xa3   :  { %116 = vsyncadd [#allocation4], 4294966784 }
  0xa4   :  { %62 = vsyncpa [#allocation3], 1 }
  0xa5   :  { %63 = vsyncpa [#allocation4], 1 }

</bundles_post_ra>
